<compile_context>
chip_gen: v5e
topology: v5e:2x2
jax: 0.10.0
libtpu: 0.0.40
codegen_flags: <defaults>
</compile_context>

<pallas_src>
import functools

import jax
import jax.numpy as jnp
from jax import lax
from jax.experimental import pallas as pl
from jax.experimental.pallas import tpu as pltpu


def _round_up(v, m):
    return (v + m - 1) // m * m


# ---------------------------------------------------------------------------
# Fused kernel:  (optional per-channel affine + ReLU on the input, hoisted)
#                -> conv1d(k=3, stride=1, pad=1, bias=False)
#                -> (optional residual add)
#                -> (optional per-tile per-channel sum / sum-of-squares)
# ---------------------------------------------------------------------------
def _make_fused_conv_kernel(*, k_size, tl, hb, l_real,
                            apply_in_act, add_residual, emit_stats):
    def kernel(*refs):
        it = iter(refs)
        xm_ref = next(it)                                 # (1, tl, cp_in)  main tile
        xl_ref = next(it)                                 # (1, hb, cp_in)  left-halo block
        xr_ref = next(it)                                 # (1, hb, cp_in)  right-halo block
        w_ref = next(it)                                  # (k_size, cp_in, cp_out)
        scale_ref = next(it) if apply_in_act else None    # (1, cp_in) f32
        shift_ref = next(it) if apply_in_act else None    # (1, cp_in) f32
        res_ref = next(it) if add_residual else None      # (1, tl, cp_out)
        o_ref = next(it)                                  # (1, tl, cp_out)
        sum_ref = next(it) if emit_stats else None        # (1, 1, cp_out) f32
        sq_ref = next(it) if emit_stats else None         # (1, 1, cp_out) f32
        scr_ref = next(it)                                # (tl + 8, cp_in) activated window

        li = pl.program_id(1)
        row0 = li * tl                                    # first output row of this tile
        iota = lax.broadcasted_iota(jnp.int32, (tl, 1), 0)
        cdt = scr_ref.dtype

        if apply_in_act:
            sc = scale_ref[...]          # rsqrt computed once in the wrapper;
            sh = shift_ref[...]          # scale/shift hoisted once per tile here.

        def activate(v, valid):
            # BN-affine + ReLU of the previous conv (if any) plus the conv
            # zero-padding / validity mask, applied ONCE per row (hoisted out
            # of the k-tap loop).
            if apply_in_act:
                a = v.astype(jnp.float32) * sc + sh
                a = jnp.maximum(a, 0.0)
                a = jnp.where(valid, a, 0.0)
                return a.astype(cdt)
            return jnp.where(valid, v, jnp.zeros_like(v))

        # Assemble activated rows [row0-1, row0+tl] into scratch: row m <-> row0+m-1.
        scr_ref[pl.ds(1, tl), :] = activate(xm_ref[0], (row0 + iota) < l_real)
        scr_ref[pl.ds(0, 1), :] = activate(xl_ref[0, pl.ds(hb - 1, 1), :],
                                           row0 - 1 >= 0)
        scr_ref[pl.ds(tl + 1, 1), :] = activate(xr_ref[0, pl.ds(0, 1), :],
                                                row0 + tl < l_real)

        cp_out = o_ref.shape[-1]
        acc = jnp.zeros((tl, cp_out), jnp.float32)
        # conv1d(k=3, pad=1) as k_size shifted (tl, cp_in)@(cp_in, cp_out) MXU matmuls.
        for k in range(k_size):
            acc = acc + jnp.dot(scr_ref[pl.ds(k, tl), :], w_ref[k],
                                preferred_element_type=jnp.float32)

        if add_residual:
            acc = acc + res_ref[0].astype(jnp.float32)

        if emit_stats:
            ym = jnp.where((row0 + iota) < l_real, acc, 0.0)   # exclude length padding
            sum_ref[0] = jnp.sum(ym, axis=0, keepdims=True)
            sq_ref[0] = jnp.sum(ym * ym, axis=0, keepdims=True)

        o_ref[0] = acc.astype(o_ref.dtype)

    return kernel


def _fused_conv(x_slab, w_kio, *, tl, l_real, in_scale=None, in_shift=None,
                residual=None, emit_stats=False, out_dtype=jnp.float32):
    """x_slab: (N, LP, cp_in) channel/length-padded slab; w_kio: (K, cp_in, cp_out).

    Output rows [l_real, LP) are junk (built from masked inputs / junk residual)
    and must be masked by the consumer; rows [0, l_real) are exact.
    """
    n, lp, cp_in = x_slab.shape
    k_size, cpi2, cp_out = w_kio.shape
    assert k_size == 3 and cpi2 == cp_in
    assert cp_in % 128 == 0 and cp_out % 128 == 0
    hb = 16 if jnp.dtype(x_slab.dtype).itemsize == 2 else 8    # halo block height
    assert tl % hb == 0 and lp % tl == 0
    n_l = lp // tl
    blk = tl // hb

    apply_in_act = in_scale is not None
    add_residual = residual is not None

    # The same slab is read through three specs: the output tile's rows plus the
    # two hb-row blocks containing the +-1 halo rows.  No full-sequence-resident
    # slab -> VMEM use is independent of L (matters on v7x's 64 MiB VMEM/TC).
    args = [x_slab, x_slab, x_slab, w_kio]
    in_specs = [
        pl.BlockSpec((1, tl, cp_in), lambda ni, li: (ni, li, 0)),
        pl.BlockSpec((1, hb, cp_in),
                     lambda ni, li: (ni, jnp.maximum(li * blk - 1, 0), 0)),
        pl.BlockSpec((1, hb, cp_in),
                     lambda ni, li: (ni, jnp.minimum((li + 1) * blk, lp // hb - 1), 0)),
        # TODO(synk): pipeline_mode=pl.Buffered(1) on this constant-index weight
        #             block would reclaim one weight copy of VMEM on v7x.
        pl.BlockSpec((k_size, cp_in, cp_out), lambda ni, li: (0, 0, 0)),
    ]
    if apply_in_act:
        args += [in_scale.astype(jnp.float32).reshape(1, cp_in),
                 in_shift.astype(jnp.float32).reshape(1, cp_in)]
        in_specs += [pl.BlockSpec((1, cp_in), lambda ni, li: (0, 0)),
                     pl.BlockSpec((1, cp_in), lambda ni, li: (0, 0))]
    if add_residual:
        assert residual.shape == (n, lp, cp_out)
        args += [residual]
        in_specs += [pl.BlockSpec((1, tl, cp_out), lambda ni, li: (ni, li, 0))]

    out_shape = [jax.ShapeDtypeStruct((n, lp, cp_out), out_dtype)]
    out_specs = [pl.BlockSpec((1, tl, cp_out), lambda ni, li: (ni, li, 0))]
    if emit_stats:
        # Per-(batch, length-tile) partial stats: no revisited output block, so
        # BOTH grid axes stay "parallel" (v7x megacore even at N=1); the wrapper
        # reduces the partials before forming scale/shift.
        out_shape += [jax.ShapeDtypeStruct((n * n_l, 1, cp_out), jnp.float32),
                      jax.ShapeDtypeStruct((n * n_l, 1, cp_out), jnp.float32)]
        out_specs += [pl.BlockSpec((1, 1, cp_out), lambda ni, li: (ni * n_l + li, 0, 0)),
                      pl.BlockSpec((1, 1, cp_out), lambda ni, li: (ni * n_l + li, 0, 0))]

    kernel = _make_fused_conv_kernel(
        k_size=k_size, tl=tl, hb=hb, l_real=l_real,
        apply_in_act=apply_in_act, add_residual=add_residual, emit_stats=emit_stats)

    itm = jnp.dtype(x_slab.dtype).itemsize
    o_itm = jnp.dtype(out_dtype).itemsize
    # Per-core VMEM estimate: double-buffered streamed blocks + weights + scratch
    # + f32 accumulator headroom.
    est = (2 * (tl + 2 * hb) * cp_in * itm
           + 2 * k_size * cp_in * cp_out * itm
           + 2 * tl * cp_out * o_itm
           + (2 * tl * cp_out * itm if add_residual else 0)
           + (4 * 2 * cp_out * 4 if emit_stats else 0)
           + (2 * 2 * cp_in * 4 if apply_in_act else 0)
           + (tl + 8) * cp_in * itm
           + tl * cp_out * 4)
    # Leave headroom under v7x's 64 MiB physical VMEM (v5e/v6e have 128 MiB).
    vmem_limit = int(min(52 * 1024 * 1024, max(32 * 1024 * 1024, 2 * est)))

    flops = 2 * k_size * n * lp * cp_in * cp_out
    bytes_accessed = (x_slab.size * itm + n * n_l * 2 * hb * cp_in * itm
                      + w_kio.size * itm + n * lp * cp_out * o_itm
                      + (residual.size * itm if add_residual else 0)
                      + (2 * n * n_l * cp_out * 4 if emit_stats else 0))

    outs = pl.pallas_call(
        kernel,
        grid=(n, n_l),
        in_specs=in_specs,
        out_specs=tuple(out_specs),
        out_shape=tuple(out_shape),
        scratch_shapes=[pltpu.VMEM((tl + 8, cp_in), x_slab.dtype)],
        compiler_params=pltpu.CompilerParams(
            dimension_semantics=("parallel", "parallel"),
            vmem_limit_bytes=vmem_limit),
        cost_estimate=pl.CostEstimate(flops=int(flops), transcendentals=0,
                                      bytes_accessed=int(bytes_accessed)),
    )(*args)
    if emit_stats:
        return outs[0], outs[1], outs[2]
    return outs[0], None, None


# ---------------------------------------------------------------------------
# DecoderBlock wrapper
# ---------------------------------------------------------------------------
def decoder_block(x_ncl, params, *, tile_l=256, compute_dtype=jnp.float32, eps=1e-5):
    """x_ncl: (N, c_in, L) float32, PyTorch NCL layout.  Returns (N, c_in, L) f32."""
    n, c_in, l = x_ncl.shape
    c_h = params["w1a"].shape[0]
    cp_in = _round_up(c_in, 128)
    cp_h = _round_up(c_h, 128)

    # bf16 packs 16 rows per sublane group -> keep tiles 16-row aligned there.
    min_tile = 16 if jnp.dtype(compute_dtype).itemsize == 2 else 8
    tl = max(min_tile, min(int(tile_l), _round_up(l, min_tile)))
    tl = _round_up(tl, min_tile)
    lp = _round_up(l, tl)

    def prep_w(w, cpi, cpo):
        c_out_w, c_in_w, k = w.shape
        wk = jnp.transpose(w, (2, 1, 0))                       # (K, C_in, C_out)
        wk = jnp.pad(wk, ((0, 0), (0, cpi - c_in_w), (0, cpo - c_out_w)))
        return wk.astype(compute_dtype)

    # Residual stream: NLC slab, channel-padded to 128 lanes, length-padded to lp.
    # It stays in this layout across both blocks (no per-conv pad/slice round
    # trips); rows >= l may hold junk after a conv and are masked in-kernel.
    stream = jnp.pad(jnp.transpose(x_ncl, (0, 2, 1)),
                     ((0, 0), (0, lp - l), (0, cp_in - c_in))).astype(compute_dtype)

    blocks = [(params["w1a"], params["g1"], params["b1"], params["w1b"]),
              (params["w2a"], params["g2"], params["b2"], params["w2b"])]
    for wa, ga, ba, wb in blocks:
        wa_p = prep_w(wa, cp_in, cp_h)
        wb_p = prep_w(wb, cp_h, cp_in)
        g_p = jnp.pad(ga.astype(jnp.float32), (0, cp_h - c_h))
        b_p = jnp.pad(ba.astype(jnp.float32), (0, cp_h - c_h))

        # conv A: raw (pre-BN) activations + per-tile per-channel sum / sumsq.
        y_raw, s1, s2 = _fused_conv(stream, wa_p, tl=tl, l_real=l,
                                    emit_stats=True, out_dtype=compute_dtype)
        cnt = float(n * l)                                     # global count (N*L)
        mean = jnp.sum(s1, axis=(0, 1)) / cnt                  # (cp_h,)
        var = jnp.maximum(jnp.sum(s2, axis=(0, 1)) / cnt - mean * mean, 0.0)
        inv = lax.rsqrt(var + eps)                             # once, not per tile
        scale = g_p * inv
        shift = b_p - mean * scale     # conv bias absent; BN affine fully folded

        # conv B consumes conv A's slab directly (no slice / re-pad HBM round
        # trip), applies BN-affine + ReLU on the fly, fuses the residual add.
        stream, _, _ = _fused_conv(y_raw, wb_p, tl=tl, l_real=l,
                                   in_scale=scale, in_shift=shift,
                                   residual=stream, emit_stats=False,
                                   out_dtype=compute_dtype)

    return jnp.transpose(stream[:, :l, :c_in].astype(jnp.float32), (0, 2, 1))


# ---------------------------------------------------------------------------
# Pure-JAX reference
# ---------------------------------------------------------------------------
def _basic_conv_ref(x, w, gamma=None, beta=None, *, bn, relu, eps=1e-5):
    y = lax.conv_general_dilated(
        x, w, window_strides=(1,), padding=[(1, 1)],
        dimension_numbers=("NCH", "OIH", "NCH"), precision=lax.Precision.HIGHEST)
    if bn:
        mean = jnp.mean(y, axis=(0, 2), keepdims=True)
        var = jnp.mean((y - mean) ** 2, axis=(0, 2), keepdims=True)
        y = (y - mean) * lax.rsqrt(var + eps)
        y = y * gamma[None, :, None] + beta[None, :, None]
    if relu:
        y = jnp.maximum(y, 0.0)
    return y


def _decoder_block_ref(x, p, eps=1e-5):
    h = _basic_conv_ref(x, p["w1a"], p["g1"], p["b1"], bn=True, relu=True, eps=eps)
    h = _basic_conv_ref(h, p["w1b"], bn=False, relu=False)
    x = x + h
    h = _basic_conv_ref(x, p["w2a"], p["g2"], p["b2"], bn=True, relu=True, eps=eps)
    h = _basic_conv_ref(h, p["w2b"], bn=False, relu=False)
    x = x + h
    return x


if __name__ == "__main__":
    N, C_IN, C_H, L = 2, 4, 8, 48
    key = jax.random.PRNGKey(0)
    ks = jax.random.split(key, 9)

    def conv_w(k, c_out, c_in, ksz):
        bound = 1.0 / ((c_in * ksz) ** 0.5)
        return jax.random.uniform(k, (c_out, c_in, ksz),
                                  minval=-bound, maxval=bound, dtype=jnp.float32)

    params = {
        "w1a": conv_w(ks[0], C_H, C_IN, 3),
        "g1": 1.0 + 0.1 * jax.random.normal(ks[1], (C_H,), jnp.float32),
        "b1": 0.1 * jax.random.normal(ks[2], (C_H,), jnp.float32),
        "w1b": conv_w(ks[3], C_IN, C_H, 3),
        "w2a": conv_w(ks[4], C_H, C_IN, 3),
        "g2": 1.0 + 0.1 * jax.random.normal(ks[5], (C_H,), jnp.float32),
        "b2": 0.1 * jax.random.normal(ks[6], (C_H,), jnp.float32),
        "w2b": conv_w(ks[7], C_IN, C_H, 3),
    }
    x = jax.random.normal(ks[8], (N, C_IN, L), dtype=jnp.float32)

    ref = _decoder_block_ref(x, params)

    # f32 path; tile_l=8 -> 6 length tiles, exercising halo handling and the
    # per-tile BN-statistics partials.
    run_f32 = jax.jit(functools.partial(decoder_block, tile_l=8,
                                        compute_dtype=jnp.float32))
    out = jax.block_until_ready(run_f32(x, params))
    assert out.shape == (N, C_IN, L), out.shape
    assert jnp.allclose(out, ref, atol=1e-3, rtol=1e-3), \
        f"f32 mismatch, max err {jnp.max(jnp.abs(out - ref))}"

    # bf16 compute path (half HBM traffic + bf16 MXU), f32 accumulation / stats.
    run_bf16 = jax.jit(functools.partial(decoder_block, tile_l=16,
                                         compute_dtype=jnp.bfloat16))
    out_bf16 = jax.block_until_ready(run_bf16(x, params))
    assert bool(jnp.all(jnp.isfinite(out_bf16)))
    assert jnp.allclose(out_bf16, ref, atol=1e-1, rtol=1e-1), \
        f"bf16 mismatch, max err {jnp.max(jnp.abs(out_bf16 - ref))}"

    print("KERNEL_OK")
</pallas_src>

<mosaic_0001>
module attributes {stable_mosaic.version = 11 : i64} {
  func.func @kernel(%arg0: i32, %arg1: i32, %arg2: memref<1x8x128xf32, #tpu.memory_space<vmem>>, %arg3: memref<1x8x128xf32, #tpu.memory_space<vmem>>, %arg4: memref<1x8x128xf32, #tpu.memory_space<vmem>>, %arg5: memref<3x128x128xf32, #tpu.memory_space<vmem>>, %arg6: memref<1x8x128xf32, #tpu.memory_space<vmem>>, %arg7: memref<1x1x128xf32, #tpu.memory_space<vmem>>, %arg8: memref<1x1x128xf32, #tpu.memory_space<vmem>>, %arg9: memref<16x128xf32, #tpu.memory_space<vmem>>) attributes {dimension_semantics = [#tpu.dimension_semantics<parallel>, #tpu.dimension_semantics<parallel>], iteration_bounds = array<i64: 2, 6>, scalar_prefetch = 0 : i64, scratch_operands = 1 : i64, tpu.core_type = #tpu.core_type<tc>, window_params = [{transform_indices = @transform_0, window_bounds = array<i64: 1, 8, 128>}, {transform_indices = @transform_1, window_bounds = array<i64: 1, 8, 128>}, {transform_indices = @transform_2, window_bounds = array<i64: 1, 8, 128>}, {pipeline_mode = #tpu.pipeline_mode<synchronous>, transform_indices = @transform_3, window_bounds = array<i64: 3, 128, 128>}, {transform_indices = @transform_4, window_bounds = array<i64: 1, 8, 128>}, {transform_indices = @transform_5, window_bounds = array<i64: 1, 1, 128>}, {transform_indices = @transform_6, window_bounds = array<i64: 1, 1, 128>}]} {
    %c8_i32 = arith.constant 8 : i32
    %0 = arith.muli %arg1, %c8_i32 : i32
    %1 = tpu.iota {dimensions = array<i32: 0>} : vector<8x1xi32>
    %c0 = arith.constant 0 : index
    %c0_0 = arith.constant 0 : index
    %c0_1 = arith.constant 0 : index
    %2 = vector.load %arg2[%c0, %c0_0, %c0_1] : memref<1x8x128xf32, #tpu.memory_space<vmem>>, vector<1x8x128xf32>
    %3 = vector.shape_cast %2 : vector<1x8x128xf32> to vector<8x128xf32>
    %4 = vector.broadcast %0 : i32 to vector<8x1xi32>
    %5 = arith.addi %4, %1 : vector<8x1xi32>
    %c48_i32 = arith.constant 48 : i32
    %6 = vector.broadcast %c48_i32 : i32 to vector<8x1xi32>
    %7 = arith.cmpi slt, %5, %6 : vector<8x1xi32>
    %cst = arith.constant 0.000000e+00 : f32
    %8 = vector.broadcast %cst : f32 to vector<8x128xf32>
    %9 = vector.shape_cast %7 : vector<8x1xi1> to vector<8x1xi1>
    %10 = vector.broadcast %9 : vector<8x1xi1> to vector<8x128xi1>
    %11 = arith.select %10, %3, %8 : vector<8x128xi1>, vector<8x128xf32>
    %c1 = arith.constant 1 : index
    %c0_2 = arith.constant 0 : index
    %12 = vector.load %arg9[%c1, %c0_2] : memref<16x128xf32, #tpu.memory_space<vmem>>, vector<8x128xf32>
    tpu.vector_store %arg9[%c1, %c0_2], %11 {strides = array<i32>} : memref<16x128xf32, #tpu.memory_space<vmem>>, vector<8x128xf32>,
    %c0_3 = arith.constant 0 : index
    %c7 = arith.constant 7 : index
    %c0_4 = arith.constant 0 : index
    %13 = vector.load %arg3[%c0_3, %c7, %c0_4] : memref<1x8x128xf32, #tpu.memory_space<vmem>>, vector<1x1x128xf32>
    %14 = vector.shape_cast %13 : vector<1x1x128xf32> to vector<1x128xf32>
    %c1_i32 = arith.constant 1 : i32
    %15 = arith.subi %0, %c1_i32 : i32
    %c0_i32 = arith.constant 0 : i32
    %16 = arith.cmpi sge, %15, %c0_i32 : i32
    %cst_5 = arith.constant 0.000000e+00 : f32
    %17 = vector.broadcast %cst_5 : f32 to vector<1x128xf32>
    %18 = arith.select %16, %14, %17 : vector<1x128xf32>
    %c0_6 = arith.constant 0 : index
    %c0_7 = arith.constant 0 : index
    %19 = vector.load %arg9[%c0_6, %c0_7] : memref<16x128xf32, #tpu.memory_space<vmem>>, vector<1x128xf32>
    tpu.vector_store %arg9[%c0_6, %c0_7], %18 {strides = array<i32>} : memref<16x128xf32, #tpu.memory_space<vmem>>, vector<1x128xf32>,
    %c0_8 = arith.constant 0 : index
    %c0_9 = arith.constant 0 : index
    %c0_10 = arith.constant 0 : index
    %20 = vector.load %arg4[%c0_8, %c0_9, %c0_10] : memref<1x8x128xf32, #tpu.memory_space<vmem>>, vector<1x1x128xf32>
    %21 = vector.shape_cast %20 : vector<1x1x128xf32> to vector<1x128xf32>
    %c8_i32_11 = arith.constant 8 : i32
    %22 = arith.addi %0, %c8_i32_11 : i32
    %c48_i32_12 = arith.constant 48 : i32
    %23 = arith.cmpi slt, %22, %c48_i32_12 : i32
    %cst_13 = arith.constant 0.000000e+00 : f32
    %24 = vector.broadcast %cst_13 : f32 to vector<1x128xf32>
    %25 = arith.select %23, %21, %24 : vector<1x128xf32>
    %c9 = arith.constant 9 : index
    %c0_14 = arith.constant 0 : index
    %26 = vector.load %arg9[%c9, %c0_14] : memref<16x128xf32, #tpu.memory_space<vmem>>, vector<1x128xf32>
    tpu.vector_store %arg9[%c9, %c0_14], %25 {strides = array<i32>} : memref<16x128xf32, #tpu.memory_space<vmem>>, vector<1x128xf32>,
    %cst_15 = arith.constant 0.000000e+00 : f32
    %27 = vector.broadcast %cst_15 : f32 to vector<8x128xf32>
    %c0_16 = arith.constant 0 : index
    %c0_17 = arith.constant 0 : index
    %28 = vector.load %arg9[%c0_16, %c0_17] : memref<16x128xf32, #tpu.memory_space<vmem>>, vector<8x128xf32>
    %c0_18 = arith.constant 0 : index
    %c0_19 = arith.constant 0 : index
    %c0_20 = arith.constant 0 : index
    %29 = vector.load %arg5[%c0_18, %c0_19, %c0_20] : memref<3x128x128xf32, #tpu.memory_space<vmem>>, vector<1x128x128xf32>
    %30 = vector.shape_cast %29 : vector<1x128x128xf32> to vector<128x128xf32>
    %cst_21 = arith.constant dense<0.000000e+00> : vector<8x128xf32>
    %31 = tpu.matmul %28, %30, %cst_21 {dimension_numbers = #tpu.dot_dimension_numbers<[1], [0], [0], [1], [0, 0, 1, 1], [], []>} : vector<8x128xf32>, vector<128x128xf32>, vector<8x128xf32> -> vector<8x128xf32>
    %32 = arith.addf %27, %31 : vector<8x128xf32>
    %c1_22 = arith.constant 1 : index
    %c0_23 = arith.constant 0 : index
    %33 = vector.load %arg9[%c1_22, %c0_23] : memref<16x128xf32, #tpu.memory_space<vmem>>, vector<8x128xf32>
    %c1_24 = arith.constant 1 : index
    %c0_25 = arith.constant 0 : index
    %c0_26 = arith.constant 0 : index
    %34 = vector.load %arg5[%c1_24, %c0_25, %c0_26] : memref<3x128x128xf32, #tpu.memory_space<vmem>>, vector<1x128x128xf32>
    %35 = vector.shape_cast %34 : vector<1x128x128xf32> to vector<128x128xf32>
    %cst_27 = arith.constant dense<0.000000e+00> : vector<8x128xf32>
    %36 = tpu.matmul %33, %35, %cst_27 {dimension_numbers = #tpu.dot_dimension_numbers<[1], [0], [0], [1], [0, 0, 1, 1], [], []>} : vector<8x128xf32>, vector<128x128xf32>, vector<8x128xf32> -> vector<8x128xf32>
    %37 = arith.addf %32, %36 : vector<8x128xf32>
    %c2 = arith.constant 2 : index
    %c0_28 = arith.constant 0 : index
    %38 = vector.load %arg9[%c2, %c0_28] : memref<16x128xf32, #tpu.memory_space<vmem>>, vector<8x128xf32>
    %c2_29 = arith.constant 2 : index
    %c0_30 = arith.constant 0 : index
    %c0_31 = arith.constant 0 : index
    %39 = vector.load %arg5[%c2_29, %c0_30, %c0_31] : memref<3x128x128xf32, #tpu.memory_space<vmem>>, vector<1x128x128xf32>
    %40 = vector.shape_cast %39 : vector<1x128x128xf32> to vector<128x128xf32>
    %cst_32 = arith.constant dense<0.000000e+00> : vector<8x128xf32>
    %41 = tpu.matmul %38, %40, %cst_32 {dimension_numbers = #tpu.dot_dimension_numbers<[1], [0], [0], [1], [0, 0, 1, 1], [], []>} : vector<8x128xf32>, vector<128x128xf32>, vector<8x128xf32> -> vector<8x128xf32>
    %42 = arith.addf %37, %41 : vector<8x128xf32>
    %43 = vector.broadcast %0 : i32 to vector<8x1xi32>
    %44 = arith.addi %43, %1 : vector<8x1xi32>
    %c48_i32_33 = arith.constant 48 : i32
    %45 = vector.broadcast %c48_i32_33 : i32 to vector<8x1xi32>
    %46 = arith.cmpi slt, %44, %45 : vector<8x1xi32>
    %cst_34 = arith.constant 0.000000e+00 : f32
    %47 = vector.shape_cast %46 : vector<8x1xi1> to vector<8x1xi1>
    %48 = vector.broadcast %47 : vector<8x1xi1> to vector<8x128xi1>
    %49 = vector.broadcast %cst_34 : f32 to vector<8x128xf32>
    %50 = arith.select %48, %42, %49 : vector<8x128xi1>, vector<8x128xf32>
    %cst_35 = arith.constant dense<0.000000e+00> : vector<128xf32>
    %51 = vector.multi_reduction <add>, %50, %cst_35 [0] : vector<8x128xf32> to vector<128xf32>
    %52 = vector.shape_cast %51 : vector<128xf32> to vector<1x128xf32>
    %c0_36 = arith.constant 0 : index
    %c0_37 = arith.constant 0 : index
    %c0_38 = arith.constant 0 : index
    %53 = vector.load %arg7[%c0_36, %c0_37, %c0_38] : memref<1x1x128xf32, #tpu.memory_space<vmem>>, vector<1x1x128xf32>
    %54 = vector.shape_cast %53 : vector<1x1x128xf32> to vector<1x128xf32>
    %55 = vector.shape_cast %52 : vector<1x128xf32> to vector<1x1x128xf32>
    tpu.vector_store %arg7[%c0_36, %c0_37, %c0_38], %55 {strides = array<i32>} : memref<1x1x128xf32, #tpu.memory_space<vmem>>, vector<1x1x128xf32>,
    %56 = arith.mulf %50, %50 : vector<8x128xf32>
    %cst_39 = arith.constant dense<0.000000e+00> : vector<128xf32>
    %57 = vector.multi_reduction <add>, %56, %cst_39 [0] : vector<8x128xf32> to vector<128xf32>
    %58 = vector.shape_cast %57 : vector<128xf32> to vector<1x128xf32>
    %c0_40 = arith.constant 0 : index
    %c0_41 = arith.constant 0 : index
    %c0_42 = arith.constant 0 : index
    %59 = vector.load %arg8[%c0_40, %c0_41, %c0_42] : memref<1x1x128xf32, #tpu.memory_space<vmem>>, vector<1x1x128xf32>
    %60 = vector.shape_cast %59 : vector<1x1x128xf32> to vector<1x128xf32>
    %61 = vector.shape_cast %58 : vector<1x128xf32> to vector<1x1x128xf32>
    tpu.vector_store %arg8[%c0_40, %c0_41, %c0_42], %61 {strides = array<i32>} : memref<1x1x128xf32, #tpu.memory_space<vmem>>, vector<1x1x128xf32>,
    %c0_43 = arith.constant 0 : index
    %c0_44 = arith.constant 0 : index
    %c0_45 = arith.constant 0 : index
    %62 = vector.load %arg6[%c0_43, %c0_44, %c0_45] : memref<1x8x128xf32, #tpu.memory_space<vmem>>, vector<1x8x128xf32>
    %63 = vector.shape_cast %62 : vector<1x8x128xf32> to vector<8x128xf32>
    %64 = vector.shape_cast %42 : vector<8x128xf32> to vector<1x8x128xf32>
    tpu.vector_store %arg6[%c0_43, %c0_44, %c0_45], %64 {strides = array<i32>} : memref<1x8x128xf32, #tpu.memory_space<vmem>>, vector<1x8x128xf32>,
    return
  }
  func.func @transform_0(%arg0: i32, %arg1: i32) -> (i32, i32, i32) {
    %c0_i32 = arith.constant 0 : i32
    %c0_i32_0 = arith.constant 0 : i32
    return %arg0, %arg1, %c0_i32 : i32, i32, i32
  }
  func.func @transform_1(%arg0: i32, %arg1: i32) -> (i32, i32, i32) {
    %c1_i32 = arith.constant 1 : i32
    %0 = arith.muli %arg1, %c1_i32 : i32
    %c1_i32_0 = arith.constant 1 : i32
    %1 = arith.subi %0, %c1_i32_0 : i32
    %c0_i32 = arith.constant 0 : i32
    %2 = arith.maxsi %1, %c0_i32 : i32
    %c0_i32_1 = arith.constant 0 : i32
    %c0_i32_2 = arith.constant 0 : i32
    return %arg0, %2, %c0_i32_1 : i32, i32, i32
  }
  func.func @transform_2(%arg0: i32, %arg1: i32) -> (i32, i32, i32) {
    %c1_i32 = arith.constant 1 : i32
    %0 = arith.addi %arg1, %c1_i32 : i32
    %c1_i32_0 = arith.constant 1 : i32
    %1 = arith.muli %0, %c1_i32_0 : i32
    %c5_i32 = arith.constant 5 : i32
    %2 = arith.minsi %1, %c5_i32 : i32
    %c0_i32 = arith.constant 0 : i32
    %c0_i32_1 = arith.constant 0 : i32
    return %arg0, %2, %c0_i32 : i32, i32, i32
  }
  func.func @transform_3(%arg0: i32, %arg1: i32) -> (i32, i32, i32) {
    %c0_i32 = arith.constant 0 : i32
    %c0_i32_0 = arith.constant 0 : i32
    %c0_i32_1 = arith.constant 0 : i32
    %c0_i32_2 = arith.constant 0 : i32
    return %c0_i32, %c0_i32_0, %c0_i32_1 : i32, i32, i32
  }
  func.func @transform_4(%arg0: i32, %arg1: i32) -> (i32, i32, i32) {
    %c0_i32 = arith.constant 0 : i32
    %c0_i32_0 = arith.constant 0 : i32
    return %arg0, %arg1, %c0_i32 : i32, i32, i32
  }
  func.func @transform_5(%arg0: i32, %arg1: i32) -> (i32, i32, i32) {
    %c6_i32 = arith.constant 6 : i32
    %0 = arith.muli %arg0, %c6_i32 : i32
    %1 = arith.addi %0, %arg1 : i32
    %c0_i32 = arith.constant 0 : i32
    %c0_i32_0 = arith.constant 0 : i32
    %c0_i32_1 = arith.constant 0 : i32
    return %1, %c0_i32, %c0_i32_0 : i32, i32, i32
  }
  func.func @transform_6(%arg0: i32, %arg1: i32) -> (i32, i32, i32) {
    %c6_i32 = arith.constant 6 : i32
    %0 = arith.muli %arg0, %c6_i32 : i32
    %1 = arith.addi %0, %arg1 : i32
    %c0_i32 = arith.constant 0 : i32
    %c0_i32_0 = arith.constant 0 : i32
    %c0_i32_1 = arith.constant 0 : i32
    return %1, %c0_i32, %c0_i32_0 : i32, i32, i32
  }
}

module attributes {stable_mosaic.version = 11 : i64} {
  func.func @kernel(%arg0: i32, %arg1: i32, %arg2: memref<1x8x128xf32, #tpu.memory_space<vmem>>, %arg3: memref<1x8x128xf32, #tpu.memory_space<vmem>>, %arg4: memref<1x8x128xf32, #tpu.memory_space<vmem>>, %arg5: memref<3x128x128xf32, #tpu.memory_space<vmem>>, %arg6: memref<1x128xf32, #tpu.memory_space<vmem>>, %arg7: memref<1x128xf32, #tpu.memory_space<vmem>>, %arg8: memref<1x8x128xf32, #tpu.memory_space<vmem>>, %arg9: memref<1x8x128xf32, #tpu.memory_space<vmem>>, %arg10: memref<16x128xf32, #tpu.memory_space<vmem>>) attributes {dimension_semantics = [#tpu.dimension_semantics<parallel>, #tpu.dimension_semantics<parallel>], iteration_bounds = array<i64: 2, 6>, scalar_prefetch = 0 : i64, scratch_operands = 1 : i64, tpu.core_type = #tpu.core_type<tc>, window_params = [{transform_indices = @transform_0, window_bounds = array<i64: 1, 8, 128>}, {transform_indices = @transform_1, window_bounds = array<i64: 1, 8, 128>}, {transform_indices = @transform_2, window_bounds = array<i64: 1, 8, 128>}, {pipeline_mode = #tpu.pipeline_mode<synchronous>, transform_indices = @transform_3, window_bounds = array<i64: 3, 128, 128>}, {pipeline_mode = #tpu.pipeline_mode<synchronous>, transform_indices = @transform_4, window_bounds = array<i64: 1, 128>}, {pipeline_mode = #tpu.pipeline_mode<synchronous>, transform_indices = @transform_5, window_bounds = array<i64: 1, 128>}, {transform_indices = @transform_6, window_bounds = array<i64: 1, 8, 128>}, {transform_indices = @transform_7, window_bounds = array<i64: 1, 8, 128>}]} {
    %c8_i32 = arith.constant 8 : i32
    %0 = arith.muli %arg1, %c8_i32 : i32
    %1 = tpu.iota {dimensions = array<i32: 0>} : vector<8x1xi32>
    %c0 = arith.constant 0 : index
    %c0_0 = arith.constant 0 : index
    %2 = vector.load %arg6[%c0, %c0_0] : memref<1x128xf32, #tpu.memory_space<vmem>>, vector<1x128xf32>
    %c0_1 = arith.constant 0 : index
    %c0_2 = arith.constant 0 : index
    %3 = vector.load %arg7[%c0_1, %c0_2] : memref<1x128xf32, #tpu.memory_space<vmem>>, vector<1x128xf32>
    %c0_3 = arith.constant 0 : index
    %c0_4 = arith.constant 0 : index
    %c0_5 = arith.constant 0 : index
    %4 = vector.load %arg2[%c0_3, %c0_4, %c0_5] : memref<1x8x128xf32, #tpu.memory_space<vmem>>, vector<1x8x128xf32>
    %5 = vector.shape_cast %4 : vector<1x8x128xf32> to vector<8x128xf32>
    %6 = vector.broadcast %0 : i32 to vector<8x1xi32>
    %7 = arith.addi %6, %1 : vector<8x1xi32>
    %c48_i32 = arith.constant 48 : i32
    %8 = vector.broadcast %c48_i32 : i32 to vector<8x1xi32>
    %9 = arith.cmpi slt, %7, %8 : vector<8x1xi32>
    %10 = vector.broadcast %2 : vector<1x128xf32> to vector<8x128xf32>
    %11 = arith.mulf %5, %10 : vector<8x128xf32>
    %12 = vector.broadcast %3 : vector<1x128xf32> to vector<8x128xf32>
    %13 = arith.addf %11, %12 : vector<8x128xf32>
    %cst = arith.constant 0.000000e+00 : f32
    %14 = vector.broadcast %cst : f32 to vector<8x128xf32>
    %15 = arith.maximumf %13, %14 : vector<8x128xf32>
    %cst_6 = arith.constant 0.000000e+00 : f32
    %16 = vector.shape_cast %9 : vector<8x1xi1> to vector<8x1xi1>
    %17 = vector.broadcast %16 : vector<8x1xi1> to vector<8x128xi1>
    %18 = vector.broadcast %cst_6 : f32 to vector<8x128xf32>
    %19 = arith.select %17, %15, %18 : vector<8x128xi1>, vector<8x128xf32>
    %c1 = arith.constant 1 : index
    %c0_7 = arith.constant 0 : index
    %20 = vector.load %arg10[%c1, %c0_7] : memref<16x128xf32, #tpu.memory_space<vmem>>, vector<8x128xf32>
    tpu.vector_store %arg10[%c1, %c0_7], %19 {strides = array<i32>} : memref<16x128xf32, #tpu.memory_space<vmem>>, vector<8x128xf32>,
    %c0_8 = arith.constant 0 : index
    %c7 = arith.constant 7 : index
    %c0_9 = arith.constant 0 : index
    %21 = vector.load %arg3[%c0_8, %c7, %c0_9] : memref<1x8x128xf32, #tpu.memory_space<vmem>>, vector<1x1x128xf32>
    %22 = vector.shape_cast %21 : vector<1x1x128xf32> to vector<1x128xf32>
    %c1_i32 = arith.constant 1 : i32
    %23 = arith.subi %0, %c1_i32 : i32
    %c0_i32 = arith.constant 0 : i32
    %24 = arith.cmpi sge, %23, %c0_i32 : i32
    %25 = arith.mulf %22, %2 : vector<1x128xf32>
    %26 = arith.addf %25, %3 : vector<1x128xf32>
    %cst_10 = arith.constant 0.000000e+00 : f32
    %27 = vector.broadcast %cst_10 : f32 to vector<1x128xf32>
    %28 = arith.maximumf %26, %27 : vector<1x128xf32>
    %cst_11 = arith.constant 0.000000e+00 : f32
    %29 = vector.broadcast %cst_11 : f32 to vector<1x128xf32>
    %30 = arith.select %24, %28, %29 : vector<1x128xf32>
    %c0_12 = arith.constant 0 : index
    %c0_13 = arith.constant 0 : index
    %31 = vector.load %arg10[%c0_12, %c0_13] : memref<16x128xf32, #tpu.memory_space<vmem>>, vector<1x128xf32>
    tpu.vector_store %arg10[%c0_12, %c0_13], %30 {strides = array<i32>} : memref<16x128xf32, #tpu.memory_space<vmem>>, vector<1x128xf32>,
    %c0_14 = arith.constant 0 : index
    %c0_15 = arith.constant 0 : index
    %c0_16 = arith.constant 0 : index
    %32 = vector.load %arg4[%c0_14, %c0_15, %c0_16] : memref<1x8x128xf32, #tpu.memory_space<vmem>>, vector<1x1x128xf32>
    %33 = vector.shape_cast %32 : vector<1x1x128xf32> to vector<1x128xf32>
    %c8_i32_17 = arith.constant 8 : i32
    %34 = arith.addi %0, %c8_i32_17 : i32
    %c48_i32_18 = arith.constant 48 : i32
    %35 = arith.cmpi slt, %34, %c48_i32_18 : i32
    %36 = arith.mulf %33, %2 : vector<1x128xf32>
    %37 = arith.addf %36, %3 : vector<1x128xf32>
    %cst_19 = arith.constant 0.000000e+00 : f32
    %38 = vector.broadcast %cst_19 : f32 to vector<1x128xf32>
    %39 = arith.maximumf %37, %38 : vector<1x128xf32>
    %cst_20 = arith.constant 0.000000e+00 : f32
    %40 = vector.broadcast %cst_20 : f32 to vector<1x128xf32>
    %41 = arith.select %35, %39, %40 : vector<1x128xf32>
    %c9 = arith.constant 9 : index
    %c0_21 = arith.constant 0 : index
    %42 = vector.load %arg10[%c9, %c0_21] : memref<16x128xf32, #tpu.memory_space<vmem>>, vector<1x128xf32>
    tpu.vector_store %arg10[%c9, %c0_21], %41 {strides = array<i32>} : memref<16x128xf32, #tpu.memory_space<vmem>>, vector<1x128xf32>,
    %cst_22 = arith.constant 0.000000e+00 : f32
    %43 = vector.broadcast %cst_22 : f32 to vector<8x128xf32>
    %c0_23 = arith.constant 0 : index
    %c0_24 = arith.constant 0 : index
    %44 = vector.load %arg10[%c0_23, %c0_24] : memref<16x128xf32, #tpu.memory_space<vmem>>, vector<8x128xf32>
    %c0_25 = arith.constant 0 : index
    %c0_26 = arith.constant 0 : index
    %c0_27 = arith.constant 0 : index
    %45 = vector.load %arg5[%c0_25, %c0_26, %c0_27] : memref<3x128x128xf32, #tpu.memory_space<vmem>>, vector<1x128x128xf32>
    %46 = vector.shape_cast %45 : vector<1x128x128xf32> to vector<128x128xf32>
    %cst_28 = arith.constant dense<0.000000e+00> : vector<8x128xf32>
    %47 = tpu.matmul %44, %46, %cst_28 {dimension_numbers = #tpu.dot_dimension_numbers<[1], [0], [0], [1], [0, 0, 1, 1], [], []>} : vector<8x128xf32>, vector<128x128xf32>, vector<8x128xf32> -> vector<8x128xf32>
    %48 = arith.addf %43, %47 : vector<8x128xf32>
    %c1_29 = arith.constant 1 : index
    %c0_30 = arith.constant 0 : index
    %49 = vector.load %arg10[%c1_29, %c0_30] : memref<16x128xf32, #tpu.memory_space<vmem>>, vector<8x128xf32>
    %c1_31 = arith.constant 1 : index
    %c0_32 = arith.constant 0 : index
    %c0_33 = arith.constant 0 : index
    %50 = vector.load %arg5[%c1_31, %c0_32, %c0_33] : memref<3x128x128xf32, #tpu.memory_space<vmem>>, vector<1x128x128xf32>
    %51 = vector.shape_cast %50 : vector<1x128x128xf32> to vector<128x128xf32>
    %cst_34 = arith.constant dense<0.000000e+00> : vector<8x128xf32>
    %52 = tpu.matmul %49, %51, %cst_34 {dimension_numbers = #tpu.dot_dimension_numbers<[1], [0], [0], [1], [0, 0, 1, 1], [], []>} : vector<8x128xf32>, vector<128x128xf32>, vector<8x128xf32> -> vector<8x128xf32>
    %53 = arith.addf %48, %52 : vector<8x128xf32>
    %c2 = arith.constant 2 : index
    %c0_35 = arith.constant 0 : index
    %54 = vector.load %arg10[%c2, %c0_35] : memref<16x128xf32, #tpu.memory_space<vmem>>, vector<8x128xf32>
    %c2_36 = arith.constant 2 : index
    %c0_37 = arith.constant 0 : index
    %c0_38 = arith.constant 0 : index
    %55 = vector.load %arg5[%c2_36, %c0_37, %c0_38] : memref<3x128x128xf32, #tpu.memory_space<vmem>>, vector<1x128x128xf32>
    %56 = vector.shape_cast %55 : vector<1x128x128xf32> to vector<128x128xf32>
    %cst_39 = arith.constant dense<0.000000e+00> : vector<8x128xf32>
    %57 = tpu.matmul %54, %56, %cst_39 {dimension_numbers = #tpu.dot_dimension_numbers<[1], [0], [0], [1], [0, 0, 1, 1], [], []>} : vector<8x128xf32>, vector<128x128xf32>, vector<8x128xf32> -> vector<8x128xf32>
    %58 = arith.addf %53, %57 : vector<8x128xf32>
    %c0_40 = arith.constant 0 : index
    %c0_41 = arith.constant 0 : index
    %c0_42 = arith.constant 0 : index
    %59 = vector.load %arg8[%c0_40, %c0_41, %c0_42] : memref<1x8x128xf32, #tpu.memory_space<vmem>>, vector<1x8x128xf32>
    %60 = vector.shape_cast %59 : vector<1x8x128xf32> to vector<8x128xf32>
    %61 = arith.addf %58, %60 : vector<8x128xf32>
    %c0_43 = arith.constant 0 : index
    %c0_44 = arith.constant 0 : index
    %c0_45 = arith.constant 0 : index
    %62 = vector.load %arg9[%c0_43, %c0_44, %c0_45] : memref<1x8x128xf32, #tpu.memory_space<vmem>>, vector<1x8x128xf32>
    %63 = vector.shape_cast %62 : vector<1x8x128xf32> to vector<8x128xf32>
    %64 = vector.shape_cast %61 : vector<8x128xf32> to vector<1x8x128xf32>
    tpu.vector_store %arg9[%c0_43, %c0_44, %c0_45], %64 {strides = array<i32>} : memref<1x8x128xf32, #tpu.memory_space<vmem>>, vector<1x8x128xf32>,
    return
  }
  func.func @transform_0(%arg0: i32, %arg1: i32) -> (i32, i32, i32) {
    %c0_i32 = arith.constant 0 : i32
    %c0_i32_0 = arith.constant 0 : i32
    return %arg0, %arg1, %c0_i32 : i32, i32, i32
  }
  func.func @transform_1(%arg0: i32, %arg1: i32) -> (i32, i32, i32) {
    %c1_i32 = arith.constant 1 : i32
    %0 = arith.muli %arg1, %c1_i32 : i32
    %c1_i32_0 = arith.constant 1 : i32
    %1 = arith.subi %0, %c1_i32_0 : i32
    %c0_i32 = arith.constant 0 : i32
    %2 = arith.maxsi %1, %c0_i32 : i32
    %c0_i32_1 = arith.constant 0 : i32
    %c0_i32_2 = arith.constant 0 : i32
    return %arg0, %2, %c0_i32_1 : i32, i32, i32
  }
  func.func @transform_2(%arg0: i32, %arg1: i32) -> (i32, i32, i32) {
    %c1_i32 = arith.constant 1 : i32
    %0 = arith.addi %arg1, %c1_i32 : i32
    %c1_i32_0 = arith.constant 1 : i32
    %1 = arith.muli %0, %c1_i32_0 : i32
    %c5_i32 = arith.constant 5 : i32
    %2 = arith.minsi %1, %c5_i32 : i32
    %c0_i32 = arith.constant 0 : i32
    %c0_i32_1 = arith.constant 0 : i32
    return %arg0, %2, %c0_i32 : i32, i32, i32
  }
  func.func @transform_3(%arg0: i32, %arg1: i32) -> (i32, i32, i32) {
    %c0_i32 = arith.constant 0 : i32
    %c0_i32_0 = arith.constant 0 : i32
    %c0_i32_1 = arith.constant 0 : i32
    %c0_i32_2 = arith.constant 0 : i32
    return %c0_i32, %c0_i32_0, %c0_i32_1 : i32, i32, i32
  }
  func.func @transform_4(%arg0: i32, %arg1: i32) -> (i32, i32) {
    %c0_i32 = arith.constant 0 : i32
    %c0_i32_0 = arith.constant 0 : i32
    %c0_i32_1 = arith.constant 0 : i32
    return %c0_i32, %c0_i32_0 : i32, i32
  }
  func.func @transform_5(%arg0: i32, %arg1: i32) -> (i32, i32) {
    %c0_i32 = arith.constant 0 : i32
    %c0_i32_0 = arith.constant 0 : i32
    %c0_i32_1 = arith.constant 0 : i32
    return %c0_i32, %c0_i32_0 : i32, i32
  }
  func.func @transform_6(%arg0: i32, %arg1: i32) -> (i32, i32, i32) {
    %c0_i32 = arith.constant 0 : i32
    %c0_i32_0 = arith.constant 0 : i32
    return %arg0, %arg1, %c0_i32 : i32, i32, i32
  }
  func.func @transform_7(%arg0: i32, %arg1: i32) -> (i32, i32, i32) {
    %c0_i32 = arith.constant 0 : i32
    %c0_i32_0 = arith.constant 0 : i32
    return %arg0, %arg1, %c0_i32 : i32, i32, i32
  }
}

</mosaic_0001>

<bundles_post_ra>
// kernel: decoder_block.4
= control target key start
LH: loop header
LB: loop body
LE: loop exit
PB: predicated region body
PF: predicated region fallthrough
CT: control target
= control target key end

     0   :  { %s942_s21 = smov 0   ;;  %s944_s22 = smov 0   ;;  %s1230_s0 = inlined_call_operand.vmem [shape: f32[2,48,128], index: 0, kind: input, shape index: {}, may-alias: {0,1,2}]   ;;  %s1231_s1 = inlined_call_operand.vmem [shape: f32[2,48,128], index: 1, kind: input, shape index: {}, may-alias: {0,1,2}]   ;;  %s1232_s2 = inlined_call_operand.vmem [shape: f32[2,48,128], index: 2, kind: input, shape index: {}, may-alias: {0,1,2}]   ;;  %s1233_s3 = inlined_call_operand.vmem [shape: f32[3,128,128], index: 3, kind: input, shape index: {}]   ;;  %s1234_s4 = inlined_call_operand.vmem [shape: f32[2,48,128], index: 4, kind: output, shape index: {0}]   ;;  %s1235_s5 = inlined_call_operand.vmem [shape: f32[12,1,128], index: 5, kind: output, shape index: {1}]   ;;  %s1236_s6 = inlined_call_operand.vmem [shape: f32[12,1,128], index: 6, kind: output, shape index: {2}]  }
   0x1   :  { %s946_s23 = smov 0   ;;  %s948_s24 = smov 0  }
   0x2   :  { %s950_s25 = smov 0  }
   0x3 LB: > { %s26_s26 = sadd.s32 1, %s897_s23  ;;  %s29_s27 = sadd.s32 1, %s901_s24  ;;  %s905_s25 = sphi %s950_s25, %s17_s25   ;;  %s901_s24 = sphi %s948_s24, %s1246_s24   ;;  %s897_s23 = sphi %s946_s23, %s1245_s23   ;;  %s893_s22 = sphi %s944_s22, %s1244_s22   ;;  %s889_s21 = sphi %s942_s21, %s1243_s21  }
   0x4   : > { %p27_p0 = scmp.ge.s32.totalorder %s26_s26, 6  ;;  %p773_p1 = scmp.ge.s32.totalorder %s905_s25, 1 }
   0x5   : > { %p298_p2 = scmp.lt.s32.totalorder %s905_s25, 13 }
   0x6   : > { %s1248_s26 = smov (%p27_p0, %s26_s26), 0  ;;  %s1250_s27 = smov (!%p27_p0, %s29_s27), %s901_s24 }
   0x7   : > { %p299_p3 = pnand %p773_p1, %p298_p2  ;;  %p31_p4 = scmp.ge.s32.totalorder %s1250_s27, 2 }
   0x8   : > { %p366_p5 = scmp.lt.s32.totalorder (!%p299_p3), %s893_s22, 1  ;;  %p368_p6 = scmp.lt.s32.totalorder (!%p299_p3), %s889_s21, 5 }
   0x9   : > { %s1252_s27 = smov (%p31_p4, %s1250_s27), 0  ;;  %302 = sbr.rel (%p299_p3) target bundleno = 196 (0xc4), region = 36 }
   0xa   : > { %1237 = sst [smem:[#allocation3_spill]] %s1252_s27  ;;  %s388_s14 = sadd.s32 (!%p299_p3), 1, %s889_s21 }
   0xb   : > { %s995_s15 = sshll.u32 (!%p299_p3), %s889_s21, 3  ;;  %p1023_p7 = scmp.lt.s32.totalorder (!%p299_p3), %s388_s14, 5 }
   0xc   : > { %s444_s19 = sadd.s32 (!%p299_p3), 8, %s995_s15  ;;  %s1033_s20 = sadd.s32 (!%p299_p3), 4294967295, %s889_s21 }
   0xd   : > { %p1042_p8 = scmp.lt.s32.totalorder (!%p299_p3), %s444_s19, 48  ;;  %p375_p9 = scmp.gt.s32.totalorder (!%p299_p3), %s1033_s20, 0 }
   0xe   : > { %v820_v0 = vld [vmem:[%s1233_s3 + $0x178] sm:$0xff]  ;;  %v819_v1 = vld [vmem:[%s1233_s3 + $0x170] sm:$0xff]  ;;  %v425_v3 = vlaneseq  ;;  %v818_v6 = vld [vmem:[%s1233_s3 + $0x168] sm:$0xff]  ;;  %s367_s29 = scalar_select %p366_p5, %s893_s22, 1  ;;  %v428_v14 = vstv %s995_s15 }
   0xf   : > { %v804_v2 = vld [vmem:[%s1233_s3 + $0xf8] sm:$0xff]  ;;  %544 = vmatpush.msra.mxu2 %v820_v0  ;;  %v803_v5 = vld [vmem:[%s1233_s3 + $0xf0] sm:$0xff]  ;;  %v802_v8 = vld [vmem:[%s1233_s3 + $0xe8] sm:$0xff]  ;;  %s369_s8 = scalar_select %p368_p6, %s889_s21, 5 }
  0x10   : > { %486 = vmatpush.msra.mxu0 %v804_v2  ;;  %v467_v4 = vld [vmem:[%s1233_s3 + $0x78] sm:$0xff]  ;;  %v466_v7 = vld [vmem:[%s1233_s3 + $0x70] sm:$0xff]  ;;  %v465_v9 = vld [vmem:[%s1233_s3 + $0x68] sm:$0xff]  ;;  %s1019_s13 = smul.u32 6, %s367_s29  ;;  %v426_v12 = vshrl.u32 %v425_v3, 7  ;;  %p776_p10 = scmp.lt.s32.totalorder %s1033_s20, 5 }
  0x11   : > { %506 = vmatpush.msra.mxu1 %v467_v4  ;;  %545 = vmatpush.msra.mxu2 %v819_v1  ;;  %v817_v10 = vld [vmem:[%s1233_s3 + $0x160] sm:$0xff]  ;;  %v816_v15 = vld [vmem:[%s1233_s3 + $0x158] sm:$0xff]  ;;  %v815_v18 = vld [vmem:[%s1233_s3 + $0x150] sm:$0xff]  ;;  %s1254_s14 = smov (!%p1023_p7, %s388_s14), 5  ;;  %s788_s29 = sadd.s32 4294967295, %s995_s15 }
  0x12   : > { %487 = vmatpush.msra.mxu0 %v803_v5  ;;  %v801_v11 = vld [vmem:[%s1233_s3 + $0xe0] sm:$0xff]  ;;  %v800_v16 = vld [vmem:[%s1233_s3 + $0xd8] sm:$0xff]  ;;  %s371_s9 = sadd.s32 %s1019_s13, %s369_s8  ;;  %v799_v19 = vld [vmem:[%s1233_s3 + $0xd0] sm:$0xff]  ;;  %v1062_v20 = vadd.s32 %v428_v14, %v426_v12  ;;  %s1256_s14 = smov (!%p1023_p7, %s1254_s14), 5 }
  0x13   : > { %507 = vmatpush.msra.mxu1 %v466_v7  ;;  %546 = vmatpush.msra.mxu2 %v818_v6  ;;  %v464_v13 = vld [vmem:[%s1233_s3 + $0x60] sm:$0xff]  ;;  %v463_v17 = vld [vmem:[%s1233_s3 + $0x58] sm:$0xff]  ;;  %s1049_s17 = sshll.u32 %s371_s9, 3  ;;  %v462_v21 = vld [vmem:[%s1233_s3 + $0x50] sm:$0xff]  ;;  %s396_s19 = sadd.s32 %s1019_s13, %s1256_s14 }
  0x14   : > { %488 = vmatpush.msra.mxu0 %v802_v8  ;;  %v814_v22 = vld [vmem:[%s1233_s3 + $0x148] sm:$0xff]  ;;  %s446_s28 = scalar_select %p1042_p8, 1, 0  ;;  %v813_v25 = vld [vmem:[%s1233_s3 + $0x140] sm:$0xff]  ;;  %vm430_vm0 = vcmp.lt.s32.totalorder %v1062_v20, 48  ;;  %v812_v29 = vld [vmem:[%s1233_s3 + $0x138] sm:$0xff] }
  0x15   : > { %508 = vmatpush.msra.mxu1 %v465_v9  ;;  %547 = vmatpush.msra.mxu2 %v817_v10  ;;  %v798_v23 = vld [vmem:[%s1233_s3 + $0xc8] sm:$0xff]  ;;  %v797_v26 = vld [vmem:[%s1233_s3 + $0xc0] sm:$0xff]  ;;  %s376_s10 = scalar_select %p375_p9, %s1033_s20, 0  ;;  %v796_v30 = vld [vmem:[%s1233_s3 + $0xb8] sm:$0xff] }
  0x16   : > { %489 = vmatpush.msra.mxu0 %v801_v11  ;;  %v461_v24 = vld [vmem:[%s1233_s3 + $0x48] sm:$0xff]  ;;  %v447_v27 = vstv %s446_s28  ;;  %v460_v28 = vld [vmem:[%s1233_s3 + $0x40] sm:$0xff]  ;;  %s785_s28 = sshll.u32 %s396_s19, 3  ;;  %s1240_s27 = scalar_lea.vmem %s1230_s0, %s1049_s17  ;;  %v459_v32 = vld [vmem:[%s1233_s3 + $0x38] sm:$0xff] }
  0x17   : > { %509 = vmatpush.msra.mxu1 %v464_v13  ;;  %548 = vmatpush.msra.mxu2 %v816_v15  ;;  %v1111_v31 = vld [vmem:[%s1240_s27] sm:$0xff]  ;;  %vm448_vm1 = vcmp.eq.s32.totalorder %v447_v27, 1  ;;  %p1113_p11 = scmp.ge.s32.totalorder %s788_s29, 0  ;;  %s398_s30 = scalar_lea.vmem %s1232_s2, %s785_s28  ;;  %v811_v34 = vld [vmem:[%s1233_s3 + $0x130] sm:$0xff]  ;;  %v810_v39 = vld [vmem:[%s1233_s3 + $0x128] sm:$0xff] }
  0x18   : > { %490 = vmatpush.msra.mxu0 %v800_v16  ;;  %v433_v33 = vsel %vm430_vm0, %v1111_v31, 0.0  ;;  %v795_v35 = vld [vmem:[%s1233_s3 + $0xb0] sm:$0xff]  ;;  %v443_v36 = vld [vmem:[%s398_s30] sm:$0x1]  ;;  %s1258_s10 = smov (!%p776_p10, %s376_s10), 5  ;;  %v794_v40 = vld [vmem:[%s1233_s3 + $0xa8] sm:$0xff]  ;;  %s409_s29 = scalar_lea.vmem %s1234_s4, %s1049_s17 }
  0x19   : > { %510 = vmatpush.msra.mxu1 %v463_v17  ;;  %549 = vmatpush.msra.mxu2 %v815_v18  ;;  %434 = vst [vmem:[#allocation2 + $0x1] sm:$0xff] %v433_v33  ;;  %v458_v37 = vld [vmem:[%s1233_s3 + $0x30] sm:$0xff]  ;;  %v449_v38 = vsel %vm448_vm1, %v443_v36, 0.0  ;;  %s438_s28 = scalar_select %p1113_p11, 1, 0  ;;  %v457_v41 = vld [vmem:[%s1233_s3 + $0x28] sm:$0xff] }
  0x1a   : > { %491 = vmatpush.msra.mxu0 %v799_v19  ;;  %450 = vst [vmem:[#allocation2 + $0x9] sm:$0x1] %v449_v38  ;;  %s382_s20 = sadd.s32 %s1019_s13, %s1258_s10  ;;  %v809_v43 = vld [vmem:[%s1233_s3 + $0x120] sm:$0xff]  ;;  %v808_v47 = vld [vmem:[%s1233_s3 + $0x118] sm:$0xff]  ;;  %v807_v51 = vld [vmem:[%s1233_s3 + $0x110] sm:$0xff] }
  0x1b   : > { %511 = vmatpush.msra.mxu1 %v462_v21  ;;  %550 = vmatpush.msra.mxu2 %v814_v22  ;;  %s781_s27 = sshll.u32 %s382_s20, 3  ;;  %v439_v42 = vstv %s438_s28  ;;  %v793_v44 = vld [vmem:[%s1233_s3 + $0xa0] sm:$0xff]  ;;  %v792_v48 = vld [vmem:[%s1233_s3 + $0x98] sm:$0xff]  ;;  %v791_v52 = vld [vmem:[%s1233_s3 + $0x90] sm:$0xff] }
  0x1c   : > { %492 = vmatpush.msra.mxu0 %v798_v23  ;;  %s384_s13 = scalar_lea.vmem %s1231_s1, %s781_s27  ;;  %vm440_vm2 = vcmp.eq.s32.totalorder %v439_v42, 1  ;;  %v456_v45 = vld [vmem:[%s1233_s3 + $0x20] sm:$0xff]  ;;  %v455_v50 = vld [vmem:[%s1233_s3 + $0x18] sm:$0xff]  ;;  %v454_v53 = vld [vmem:[%s1233_s3 + $0x10] sm:$0xff]  ;;  %s410_s27 = smul.u32 6, %s893_s22 }
  0x1d   : > { %512 = vmatpush.msra.mxu1 %v461_v24  ;;  %551 = vmatpush.msra.mxu2 %v813_v25  ;;  %v435_v46 = vld [vmem:[%s384_s13 + $0x7] sm:$0x1]  ;;  %v806_v54 = vld [vmem:[%s1233_s3 + $0x108] sm:$0xff] }
  0x1e   : > { %493 = vmatpush.msra.mxu0 %v797_v26  ;;  %v441_v49 = vsel %vm440_vm2, %v435_v46, 0.0  ;;  %v790_v55 = vld [vmem:[%s1233_s3 + $0x88] sm:$0xff]  ;;  %v805_v57 = vld [vmem:[%s1233_s3 + $0x100] sm:$0xff]  ;;  %s411_s9 = sadd.s32 %s889_s21, %s410_s27 }
  0x1f   : > { %513 = vmatpush.msra.mxu1 %v460_v28  ;;  %552 = vmatpush.msra.mxu2 %v812_v29  ;;  %442 = vst [vmem:[#allocation2] sm:$0x1] %v441_v49  ;;  %v453_v56 = vld [vmem:[%s1233_s3 + $0x8] sm:$0xff]  ;;  %v789_v58 = vld [vmem:[%s1233_s3 + $0x80] sm:$0xff]  ;;  %p412_p12 = scmp.lt.s32.totalorder %s411_s9, 11 }
  0x20   : > { %494 = vmatpush.msra.mxu0 %v796_v30  ;;  %v452_v60 = vld [vmem:[%s1233_s3] sm:$0xff] }
  0x21   : > { %514 = vmatpush.msra.mxu1 %v459_v32  ;;  %553 = vmatpush.msra.mxu2 %v811_v34  ;;  %v526_v59 = vld [vmem:[#allocation2 + $0x2] sm:$0xff]  ;;  %s1260_s9 = smov (!%p412_p12, %s411_s9), 11 }
  0x22   : > { %495 = vmatpush.msra.mxu0 %v795_v35  ;;  %s414_s21 = scalar_lea.vmem %s1235_s5, %s1260_s9  ;;  %s421_s13 = scalar_lea.vmem %s1236_s6, %s1260_s9 }
  0x23   : > { %515 = vmatpush.msra.mxu1 %v458_v37  ;;  %554 = vmatpush.msra.mxu2 %v810_v39 }
  0x24   : > { %496 = vmatpush.msra.mxu0 %v794_v40 }
  0x25   : > { %516 = vmatpush.msra.mxu1 %v457_v41  ;;  %555 = vmatpush.msra.mxu2 %v809_v43 }
  0x26   : > { %497 = vmatpush.msra.mxu0 %v793_v44  ;;  %v451_v61 = vld [vmem:[#allocation2] sm:$0xff] }
  0x27   : > { %517 = vmatpush.msra.mxu1 %v456_v45  ;;  %556 = vmatpush.msra.mxu2 %v808_v47 }
  0x28   : > { %498 = vmatpush.msra.mxu0 %v792_v48 }
  0x29   : > { %518 = vmatpush.msra.mxu1 %v455_v50  ;;  %557 = vmatpush.msra.mxu2 %v807_v51 }
  0x2a   : > { %499 = vmatpush.msra.mxu0 %v791_v52 }
  0x2b   : > { %519 = vmatpush.msra.mxu1 %v454_v53  ;;  %558 = vmatpush.msra.mxu2 %v806_v54 }
  0x2c   : > { %500 = vmatpush.msra.mxu0 %v790_v55 }
  0x2d   : > { %520 = vmatpush.msra.mxu1 %v453_v56  ;;  %559 = vmatpush.msra.mxu2 %v805_v57 }
  0x2e   : > { %501 = vmatpush.msra.mxu0 %v789_v58  ;;  %560 = vmatmul.f32.vlgmr.msra.gmra.mxu2 %v526_v59 }
  0x2f   : > { %521 = vmatpush.msra.mxu1 %v452_v60  ;;  %866 = vmatmul.msk.f32.vlgmr.msra.gmra.mxu0 %vm430_vm0, %v1111_v31 }
  0x30   : > { %522 = vmatmul.f32.vlgmr.msra.gmra.mxu1 %v451_v61 }
  0xac   : > { %v503_v62 = vpop.f32.mrf.mxu0 }
  0xad   : > { %v523_v63 = vpop.f32.mrf.mxu1 }
  0xae   : > { %v524_v0 = vadd.f32 %v523_v63, %v503_v62 }
  0xb1   : > { %v561_v1 = vpop.f32.mrf.mxu2 }
  0xb2   : > { %v564_v2 = vadd.f32 %v561_v1, %v524_v0 }
  0xb4   : > { %v565_v3 = vsel %vm430_vm0, %v564_v2, 0.0  ;;  %581 = vst [vmem:[%s409_s29] sm:$0xff] %v564_v2 }
  0xb5   : > { %v566_v4 = vrot.slane %v565_v3, 4  ;;  %v573_v5 = vmul.f32 %v565_v3, %v565_v3 }
  0xb7   : > { %v567_v6 = vadd.f32 %v566_v4, %v565_v3  ;;  %v574_v7 = vrot.slane %v573_v5, 4 }
  0xb9   : > { %v568_v8 = vrot.slane %v567_v6, 2  ;;  %v575_v9 = vadd.f32 %v574_v7, %v573_v5 }
  0xbb   : > { %v569_v10 = vadd.f32 %v568_v8, %v567_v6  ;;  %v576_v11 = vrot.slane %v575_v9, 2 }
  0xbd   : > { %v570_v12 = vrot.slane %v569_v10, 1  ;;  %v577_v13 = vadd.f32 %v576_v11, %v575_v9 }
  0xbf   : > { %v571_v14 = vadd.f32 %v570_v12, %v569_v10  ;;  %v578_v15 = vrot.slane %v577_v13, 1 }
  0xc1   : > { %572 = vst [vmem:[%s414_s21] sm:$0x1] %v571_v14  ;;  %v579_v16 = vadd.f32 %v578_v15, %v577_v13 }
  0xc3   : > { %580 = vst [vmem:[%s421_s13] sm:$0x1] %v579_v16 }
  0xc4 PF: > { %s17_s25 = sadd.s32 1, %s905_s25   ;;  %s1242_s10 = sld [smem:[#allocation3_spill]] }
  0xc5   : > { %p14_p13 = scmp.ge.s32.totalorder %s17_s25, 14   ;;  %s1243_s21 = smov %s897_s23 }
  0xc6   : > { %s1244_s22 = smov %s901_s24  ;;  %s1245_s23 = smov %s1248_s26 }
  0xc7   :  { %16 = sbr.rel (!%p14_p13) target bundleno = 3 (0x3), region = 98 }
  0xca   : > { %s1246_s24 = smov %s1242_s10 }

// kernel: decoder_block.5
= control target key start
LH: loop header
LB: loop body
LE: loop exit
PB: predicated region body
PF: predicated region fallthrough
CT: control target
= control target key end

     0   :  { %s929_s24 = smov 0   ;;  %s931_s25 = smov 0   ;;  %s1222_s0 = inlined_call_operand.vmem [shape: f32[2,48,128], index: 0, kind: input, shape index: {}, may-alias: {0,1,2}]   ;;  %s1223_s1 = inlined_call_operand.vmem [shape: f32[2,48,128], index: 1, kind: input, shape index: {}, may-alias: {0,1,2}]   ;;  %s1224_s2 = inlined_call_operand.vmem [shape: f32[2,48,128], index: 2, kind: input, shape index: {}, may-alias: {0,1,2}]   ;;  %s1225_s3 = inlined_call_operand.vmem [shape: f32[3,128,128], index: 3, kind: input, shape index: {}]   ;;  %s1226_s4 = inlined_call_operand.vmem [shape: f32[1,128], index: 4, kind: input, shape index: {}]   ;;  %s1227_s5 = inlined_call_operand.vmem [shape: f32[1,128], index: 5, kind: input, shape index: {}]   ;;  %s1228_s6 = inlined_call_operand.vmem [shape: f32[2,48,128], index: 6, kind: input, shape index: {}]   ;;  %s1229_s7 = inlined_call_operand.vmem [shape: f32[2,48,128], index: 7, kind: output, shape index: {}]  }
   0x1   :  { %s933_s26 = smov 0   ;;  %s935_s27 = smov 0  }
   0x2   :  { %s937_s28 = smov 0  }
   0x3 LB: > { %s26_s29 = sadd.s32 1, %s879_s26  ;;  %s29_s30 = sadd.s32 1, %s883_s27  ;;  %s887_s28 = sphi %s937_s28, %s17_s28   ;;  %s883_s27 = sphi %s935_s27, %s1240_s27   ;;  %s879_s26 = sphi %s933_s26, %s1239_s26   ;;  %s875_s25 = sphi %s931_s25, %s1238_s25   ;;  %s871_s24 = sphi %s929_s24, %s1237_s24  }
   0x4   : > { %p27_p0 = scmp.ge.s32.totalorder %s26_s29, 6  ;;  %p752_p1 = scmp.ge.s32.totalorder %s887_s28, 1 }
   0x5   : > { %p325_p2 = scmp.lt.s32.totalorder %s887_s28, 13 }
   0x6   : > { %s1242_s29 = smov (%p27_p0, %s26_s29), 0  ;;  %s1244_s30 = smov (!%p27_p0, %s29_s30), %s883_s27 }
   0x7   : > { %p326_p3 = pnand %p752_p1, %p325_p2  ;;  %p31_p4 = scmp.ge.s32.totalorder %s1244_s30, 2 }
   0x8   : > { %p393_p5 = scmp.lt.s32.totalorder (!%p326_p3), %s875_s25, 1  ;;  %p395_p6 = scmp.lt.s32.totalorder (!%p326_p3), %s871_s24, 5 }
   0x9   : > { %s1246_s30 = smov (%p31_p4, %s1244_s30), 0  ;;  %329 = sbr.rel (%p326_p3) target bundleno = 183 (0xb7), region = 48 }
   0xa   : > { %1230 = sst [smem:[#allocation3_spill]] %s1246_s30  ;;  %s415_s18 = sadd.s32 (!%p326_p3), 1, %s871_s24 }
   0xb   : > { %s982_s19 = sshll.u32 (!%p326_p3), %s871_s24, 3  ;;  %p1010_p7 = scmp.lt.s32.totalorder (!%p326_p3), %s415_s18, 5 }
   0xc   : > { %s479_s23 = sadd.s32 (!%p326_p3), 8, %s982_s19  ;;  %s1019_s8 = sadd.s32 (!%p326_p3), 4294967295, %s871_s24 }
   0xd   : > { %p1028_p8 = scmp.lt.s32.totalorder (!%p326_p3), %s479_s23, 48  ;;  %p402_p9 = scmp.gt.s32.totalorder (!%p326_p3), %s1019_s8, 0 }
   0xe   : > { %v800_v0 = vld [vmem:[%s1225_s3 + $0x178] sm:$0xff]  ;;  %v799_v1 = vld [vmem:[%s1225_s3 + $0x170] sm:$0xff]  ;;  %v798_v5 = vld [vmem:[%s1225_s3 + $0x168] sm:$0xff]  ;;  %s1248_s25 = smov (!%p393_p5, %s875_s25), 1  ;;  %v446_v17 = vlaneseq  ;;  %p755_p10 = scmp.lt.s32.totalorder %s1019_s8, 5  ;;  %v451_v27 = vstv %s982_s19 }
   0xf   : > { %v784_v2 = vld [vmem:[%s1225_s3 + $0xf8] sm:$0xff]  ;;  %582 = vmatpush.msra.mxu2 %v800_v0  ;;  %v783_v4 = vld [vmem:[%s1225_s3 + $0xf0] sm:$0xff]  ;;  %v782_v7 = vld [vmem:[%s1225_s3 + $0xe8] sm:$0xff]  ;;  %s396_s12 = scalar_select %p395_p6, %s871_s24, 5 }
  0x10   : > { %524 = vmatpush.msra.mxu0 %v784_v2  ;;  %v505_v3 = vld [vmem:[%s1225_s3 + $0x78] sm:$0xff]  ;;  %v504_v6 = vld [vmem:[%s1225_s3 + $0x70] sm:$0xff]  ;;  %v503_v8 = vld [vmem:[%s1225_s3 + $0x68] sm:$0xff]  ;;  %s1006_s17 = smul.u32 6, %s1248_s25  ;;  %s1250_s18 = smov (!%p1010_p7, %s415_s18), 5  ;;  %v447_v24 = vshrl.u32 %v446_v17, 7 }
  0x11   : > { %544 = vmatpush.msra.mxu1 %v505_v3  ;;  %583 = vmatpush.msra.mxu2 %v799_v1  ;;  %v797_v9 = vld [vmem:[%s1225_s3 + $0x160] sm:$0xff]  ;;  %v796_v12 = vld [vmem:[%s1225_s3 + $0x158] sm:$0xff]  ;;  %v795_v15 = vld [vmem:[%s1225_s3 + $0x150] sm:$0xff]  ;;  %s1252_s18 = smov (!%p1010_p7, %s1250_s18), 5  ;;  %s768_s10 = sadd.s32 4294967295, %s982_s19 }
  0x12   : > { %525 = vmatpush.msra.mxu0 %v783_v4  ;;  %v781_v10 = vld [vmem:[%s1225_s3 + $0xe0] sm:$0xff]  ;;  %v780_v13 = vld [vmem:[%s1225_s3 + $0xd8] sm:$0xff]  ;;  %s398_s13 = sadd.s32 %s1006_s17, %s396_s12  ;;  %v779_v16 = vld [vmem:[%s1225_s3 + $0xd0] sm:$0xff]  ;;  %s423_s24 = sadd.s32 %s1006_s17, %s1252_s18  ;;  %v1120_v36 = vadd.s32 %v451_v27, %v447_v24 }
  0x13   : > { %545 = vmatpush.msra.mxu1 %v504_v6  ;;  %584 = vmatpush.msra.mxu2 %v798_v5  ;;  %v502_v11 = vld [vmem:[%s1225_s3 + $0x60] sm:$0xff]  ;;  %v501_v14 = vld [vmem:[%s1225_s3 + $0x58] sm:$0xff]  ;;  %s1035_s21 = sshll.u32 %s398_s13, 3  ;;  %v500_v18 = vld [vmem:[%s1225_s3 + $0x50] sm:$0xff]  ;;  %s764_s23 = sshll.u32 %s423_s24, 3 }
  0x14   : > { %526 = vmatpush.msra.mxu0 %v782_v7  ;;  %v794_v19 = vld [vmem:[%s1225_s3 + $0x148] sm:$0xff]  ;;  %v793_v22 = vld [vmem:[%s1225_s3 + $0x140] sm:$0xff]  ;;  %s403_s22 = scalar_select %p402_p9, %s1019_s8, 0  ;;  %v792_v25 = vld [vmem:[%s1225_s3 + $0x138] sm:$0xff]  ;;  %vm453_vm0 = vcmp.lt.s32.totalorder %v1120_v36, 48 }
  0x15   : > { %546 = vmatpush.msra.mxu1 %v503_v8  ;;  %585 = vmatpush.msra.mxu2 %v797_v9  ;;  %v778_v20 = vld [vmem:[%s1225_s3 + $0xc8] sm:$0xff]  ;;  %v777_v23 = vld [vmem:[%s1225_s3 + $0xc0] sm:$0xff]  ;;  %v791_v28 = vld [vmem:[%s1225_s3 + $0x130] sm:$0xff]  ;;  %p1099_p11 = scmp.ge.s32.totalorder %s768_s10, 0  ;;  %s425_s25 = scalar_lea.vmem %s1224_s2, %s764_s23 }
  0x16   : > { %527 = vmatpush.msra.mxu0 %v781_v10  ;;  %v499_v21 = vld [vmem:[%s1225_s3 + $0x48] sm:$0xff]  ;;  %v498_v26 = vld [vmem:[%s1225_s3 + $0x40] sm:$0xff]  ;;  %v776_v29 = vld [vmem:[%s1225_s3 + $0xb8] sm:$0xff]  ;;  %s1234_s12 = scalar_lea.vmem %s1222_s0, %s1035_s21  ;;  %s1254_s22 = smov (!%p755_p10, %s403_s22), 5 }
  0x17   : > { %547 = vmatpush.msra.mxu1 %v502_v11  ;;  %586 = vmatpush.msra.mxu2 %v796_v12  ;;  %v497_v30 = vld [vmem:[%s1225_s3 + $0x38] sm:$0xff]  ;;  %v448_v31 = vld [vmem:[%s1226_s4] sm:$0x1]  ;;  %v775_v35 = vld [vmem:[%s1225_s3 + $0xb0] sm:$0xff]  ;;  %s1235_s30 = scalar_select %p1028_p8, 1, 0 }
  0x18   : > { %528 = vmatpush.msra.mxu0 %v780_v13  ;;  %v449_v32 = vld [vmem:[%s1227_s5] sm:$0x1]  ;;  %v496_v39 = vld [vmem:[%s1225_s3 + $0x30] sm:$0xff]  ;;  %s473_s11 = scalar_select %p1099_p11, 1, 0  ;;  %v790_v43 = vld [vmem:[%s1225_s3 + $0x128] sm:$0xff] }
  0x19   : > { %548 = vmatpush.msra.mxu1 %v501_v14  ;;  %587 = vmatpush.msra.mxu2 %v795_v15  ;;  %v450_v33 = vld [vmem:[%s1234_s12] sm:$0xff]  ;;  %v485_v42 = vstv %s1235_s30  ;;  %v774_v44 = vld [vmem:[%s1225_s3 + $0xa8] sm:$0xff]  ;;  %s409_s12 = sadd.s32 %s1006_s17, %s1254_s22  ;;  %v788_v54 = vld [vmem:[%s1225_s3 + $0x118] sm:$0xff]  ;;  %s436_s18 = scalar_lea.vmem %s1228_s6, %s1035_s21 }
  0x1a   : > { %529 = vmatpush.msra.mxu0 %v779_v16  ;;  %v846_v34 = vld [vmem:[%s1226_s4] ss:$0 sm:$0xff]  ;;  %v495_v45 = vld [vmem:[%s1225_s3 + $0x28] sm:$0xff]  ;;  %s760_s14 = sshll.u32 %s409_s12, 3  ;;  %vm486_vm1 = vcmp.eq.s32.totalorder %v485_v42, 1  ;;  %v772_v55 = vld [vmem:[%s1225_s3 + $0x98] sm:$0xff]  ;;  %v474_v57 = vstv %s473_s11  ;;  %s444_s23 = scalar_lea.vmem %s1229_s7, %s1035_s21 }
  0x1b   : > { %549 = vmatpush.msra.mxu1 %v500_v18  ;;  %588 = vmatpush.msra.mxu2 %v794_v19  ;;  %v847_v37 = vld [vmem:[%s1227_s5] ss:$0 sm:$0xff]  ;;  %v457_v40 = vmul.f32 %v846_v34, %v450_v33  ;;  %s411_s13 = scalar_lea.vmem %s1223_s1, %s760_s14  ;;  %v493_v58 = vld [vmem:[%s1225_s3 + $0x18] sm:$0xff]  ;;  %v787_v61 = vld [vmem:[%s1225_s3 + $0x110] sm:$0xff]  ;;  %vm475_vm2 = vcmp.eq.s32.totalorder %v474_v57, 1 }
  0x1c   : > { %530 = vmatpush.msra.mxu0 %v778_v20  ;;  %v478_v38 = vld [vmem:[%s425_s25] sm:$0x1]  ;;  %v467_v53 = vld [vmem:[%s411_s13 + $0x7] sm:$0x1]  ;;  %v771_v62 = vld [vmem:[%s1225_s3 + $0x90] sm:$0xff] }
  0x1d   : > { %550 = vmatpush.msra.mxu1 %v499_v21  ;;  %589 = vmatpush.msra.mxu2 %v793_v22  ;;  %v481_v41 = vmul.f32 %v478_v38, %v448_v31  ;;  %v461_v46 = vadd.f32 %v847_v37, %v457_v40  ;;  %v789_v48 = vld [vmem:[%s1225_s3 + $0x120] sm:$0xff]  ;;  %v470_v56 = vmul.f32 %v467_v53, %v448_v31  ;;  %v492_v0 = vld [vmem:[%s1225_s3 + $0x10] sm:$0xff]  ;;  %v786_v1 = vld [vmem:[%s1225_s3 + $0x108] sm:$0xff] }
  0x1e   : > { %531 = vmatpush.msra.mxu0 %v777_v23  ;;  %v773_v49 = vld [vmem:[%s1225_s3 + $0xa0] sm:$0xff]  ;;  %v770_v2 = vld [vmem:[%s1225_s3 + $0x88] sm:$0xff] }
  0x1f   : > { %551 = vmatpush.msra.mxu1 %v498_v26  ;;  %590 = vmatpush.msra.mxu2 %v792_v25  ;;  %v482_v47 = vadd.f32 %v481_v41, %v449_v32  ;;  %v494_v50 = vld [vmem:[%s1225_s3 + $0x20] sm:$0xff]  ;;  %v462_v51 = vmax.f32 %v461_v46, 0.0  ;;  %v471_v63 = vadd.f32 %v470_v56, %v449_v32  ;;  %v491_v4 = vld [vmem:[%s1225_s3 + $0x8] sm:$0xff] }
  0x20   : > { %532 = vmatpush.msra.mxu0 %v776_v29  ;;  %v785_v5 = vld [vmem:[%s1225_s3 + $0x100] sm:$0xff] }
  0x21   : > { %552 = vmatpush.msra.mxu1 %v497_v30  ;;  %591 = vmatpush.msra.mxu2 %v791_v28  ;;  %v483_v52 = vmax.f32 %v482_v47, 0.0  ;;  %v465_v59 = vsel %vm453_vm0, %v462_v51, 0.0  ;;  %v472_v3 = vmax.f32 %v471_v63, 0.0  ;;  %v769_v6 = vld [vmem:[%s1225_s3 + $0x80] sm:$0xff] }
  0x22   : > { %533 = vmatpush.msra.mxu0 %v775_v35  ;;  %466 = vst [vmem:[#allocation2 + $0x1] sm:$0xff] %v465_v59  ;;  %v490_v8 = vld [vmem:[%s1225_s3] sm:$0xff] }
  0x23   : > { %553 = vmatpush.msra.mxu1 %v496_v39  ;;  %592 = vmatpush.msra.mxu2 %v790_v43  ;;  %v487_v60 = vsel %vm486_vm1, %v483_v52, 0.0  ;;  %v476_v7 = vsel %vm475_vm2, %v472_v3, 0.0  ;;  %v603_v15 = vld [vmem:[%s436_s18] sm:$0xff] }
  0x24   : > { %534 = vmatpush.msra.mxu0 %v774_v44  ;;  %488 = vst [vmem:[#allocation2 + $0x9] sm:$0x1] %v487_v60 }
  0x25   : > { %554 = vmatpush.msra.mxu1 %v495_v45  ;;  %593 = vmatpush.msra.mxu2 %v789_v48  ;;  %477 = vst [vmem:[#allocation2] sm:$0x1] %v476_v7 }
  0x26   : > { %535 = vmatpush.msra.mxu0 %v773_v49 }
  0x27   : > { %555 = vmatpush.msra.mxu1 %v494_v50  ;;  %594 = vmatpush.msra.mxu2 %v788_v54 }
  0x28   : > { %536 = vmatpush.msra.mxu0 %v772_v55 }
  0x29   : > { %556 = vmatpush.msra.mxu1 %v493_v58  ;;  %595 = vmatpush.msra.mxu2 %v787_v61 }
  0x2a   : > { %537 = vmatpush.msra.mxu0 %v771_v62 }
  0x2b   : > { %557 = vmatpush.msra.mxu1 %v492_v0  ;;  %596 = vmatpush.msra.mxu2 %v786_v1  ;;  %v564_v9 = vld [vmem:[#allocation2 + $0x2] sm:$0xff] }
  0x2c   : > { %538 = vmatpush.msra.mxu0 %v770_v2  ;;  %v489_v10 = vld [vmem:[#allocation2] sm:$0xff] }
  0x2d   : > { %558 = vmatpush.msra.mxu1 %v491_v4  ;;  %597 = vmatpush.msra.mxu2 %v785_v5 }
  0x2e   : > { %539 = vmatpush.msra.mxu0 %v769_v6  ;;  %598 = vmatmul.f32.vlgmr.msra.gmra.mxu2 %v564_v9 }
  0x2f   : > { %559 = vmatpush.msra.mxu1 %v490_v8  ;;  %848 = vmatmul.msk.f32.vlgmr.msra.gmra.mxu0 %vm453_vm0, %v462_v51 }
  0x30   : > { %560 = vmatmul.f32.vlgmr.msra.gmra.mxu1 %v489_v10 }
  0xac   : > { %v541_v11 = vpop.f32.mrf.mxu0 }
  0xad   : > { %v561_v12 = vpop.f32.mrf.mxu1 }
  0xae   : > { %v562_v13 = vadd.f32 %v561_v12, %v541_v11 }
  0xb1   : > { %v599_v14 = vpop.f32.mrf.mxu2 }
  0xb2   : > { %v602_v16 = vadd.f32 %v599_v14, %v562_v13 }
  0xb4   : > { %v604_v17 = vadd.f32 %v603_v15, %v602_v16 }
  0xb6   : > { %605 = vst [vmem:[%s444_s23] sm:$0xff] %v604_v17 }
  0xb7 PF: > { %s17_s28 = sadd.s32 1, %s887_s28   ;;  %s1236_s19 = sld [smem:[#allocation3_spill]] }
  0xb8   : > { %p14_p12 = scmp.ge.s32.totalorder %s17_s28, 14   ;;  %s1237_s24 = smov %s879_s26 }
  0xb9   : > { %s1238_s25 = smov %s883_s27  ;;  %s1239_s26 = smov %s1242_s29 }
  0xba   :  { %16 = sbr.rel (!%p14_p12) target bundleno = 3 (0x3), region = 89 }
  0xbd   : > { %s1240_s27 = smov %s1236_s19 }

</bundles_post_ra>
